<compile_context>
chip_gen: v7x
topology: tpu7x:2x2x1
jax: 0.10.0
libtpu: 0.0.40
codegen_flags: <defaults>
</compile_context>

<pallas_src>
import functools

import jax
import jax.numpy as jnp
from jax.experimental import pallas as pl
from jax.experimental.pallas import tpu as pltpu


def _round_up(n, m):
    return ((n + m - 1) // m) * m


def _ais_generate_kernel(x_ref, h_ref, w1_ref, b1_ref, w2_ref, b2_ref,
                         wih_ref, bih_ref, whh_ref, bhh_ref, o_ref, *, s):
    # Feed-forward trunk: bf16 operands on the MXU, f32 accumulate + epilogue.
    x = x_ref[...].astype(jnp.bfloat16)                              # [TB, d_in]
    h = h_ref[...]                                                   # f32 [TB, s]

    a1 = jnp.dot(x, w1_ref[...], preferred_element_type=jnp.float32) + b1_ref[...]
    a1 = jnp.maximum(a1, 0.0)
    a2 = jnp.dot(a1.astype(jnp.bfloat16), w2_ref[...],
                 preferred_element_type=jnp.float32) + b2_ref[...]
    a2 = jnp.maximum(a2, 0.0)

    # GRU cell, PyTorch gate order [r | z | n]; gates packed at true width 3*s.
    gi = jnp.dot(a2.astype(jnp.bfloat16), wih_ref[...],
                 preferred_element_type=jnp.float32) + bih_ref[...]  # [TB, 3*s]
    # Recurrent path kept in f32 so repeated application of the cell does not
    # accumulate bf16 rounding of the carried state (K=s=24, negligible MXU cost).
    gh = jnp.dot(h, whh_ref[...],
                 preferred_element_type=jnp.float32) + bhh_ref[...]  # [TB, 3*s]

    r = jax.nn.sigmoid(gi[:, 0 * s:1 * s] + gh[:, 0 * s:1 * s])
    z = jax.nn.sigmoid(gi[:, 1 * s:2 * s] + gh[:, 1 * s:2 * s])
    n = jnp.tanh(gi[:, 2 * s:3 * s] + r * gh[:, 2 * s:3 * s])
    o_ref[...] = ((1.0 - z) * n + z * h).astype(o_ref.dtype)


def prepare_params(params):
    """Cast the MXU operands to bf16.  No feature-dim padding: every array keeps
    its true shape (wih/whh stay packed [r|z|n]); recurrent weights stay f32."""
    w1, b1, w2, b2, wih, bih, whh, bhh = params
    return (w1.astype(jnp.bfloat16), b1,
            w2.astype(jnp.bfloat16), b2,
            wih.astype(jnp.bfloat16), bih,
            whh, bhh)


def ais_generate(x, h, prepared_params, *, max_block_b=1024):
    """x: [B, obs_dim+num_actions] f32, h: [B, state_dim] f32 -> h': [B, state_dim] f32."""
    w1, b1, w2, b2, wih, bih, whh, bhh = prepared_params
    B, d_in = x.shape
    s = h.shape[1]

    # Equal-size batch tiles, rounded to 8 rows: minimal batch padding
    # (e.g. B=300 -> one 304-row tile, not a second 83%-padding 256-row tile).
    n_tiles = max(1, pl.cdiv(B, max_block_b))
    block_b = _round_up(pl.cdiv(B, n_tiles), 8)
    b_p = n_tiles * block_b

    if b_p != B:
        xp = jnp.zeros((b_p, d_in), x.dtype).at[:B].set(x)
        hp = jnp.zeros((b_p, s), h.dtype).at[:B].set(h)
    else:
        xp, hp = x, h

    weights = (w1, b1, w2, b2, wih, bih, whh, bhh)

    def const_spec(a):
        # Same block every grid step -> weights DMA'd once, stay VMEM-resident.
        return pl.BlockSpec(a.shape, lambda i: (0, 0))

    flops = 2 * b_p * (w1.shape[0] * w1.shape[1] + w2.shape[0] * w2.shape[1]
                       + wih.shape[0] * wih.shape[1] + whh.shape[0] * whh.shape[1])
    bytes_accessed = (xp.size * xp.dtype.itemsize + hp.size * hp.dtype.itemsize
                      + sum(a.size * a.dtype.itemsize for a in weights)
                      + b_p * s * 4)

    out = pl.pallas_call(
        functools.partial(_ais_generate_kernel, s=s),
        out_shape=jax.ShapeDtypeStruct((b_p, s), jnp.float32),
        grid=(n_tiles,),
        in_specs=[pl.BlockSpec((block_b, d_in), lambda i: (i, 0)),
                  pl.BlockSpec((block_b, s), lambda i: (i, 0))]
                 + [const_spec(a) for a in weights],
        out_specs=pl.BlockSpec((block_b, s), lambda i: (i, 0)),
        compiler_params=pltpu.CompilerParams(
            dimension_semantics=("parallel",)),
        cost_estimate=pl.CostEstimate(
            flops=flops, transcendentals=b_p * 3 * s,
            bytes_accessed=bytes_accessed),
    )(xp, hp, *weights)
    return out if b_p == B else out[:B]


def init_params(key, state_dim, obs_dim, num_actions):
    """PyTorch-style init.  Weights stored as [in, out] (x @ W + b == nn.Linear);
    GRU gate matrices stored as [in, 3*state_dim] with gate order [r | z | n]."""
    d_in = obs_dim + num_actions
    ks = jax.random.split(key, 8)
    u = lambda k, shape, bound: jax.random.uniform(k, shape, jnp.float32, -bound, bound)
    b_l1 = 1.0 / (d_in ** 0.5)
    b_l2 = 1.0 / (64.0 ** 0.5)
    b_gru = 1.0 / (state_dim ** 0.5)
    w1 = u(ks[0], (d_in, 64), b_l1)
    b1 = u(ks[1], (1, 64), b_l1)
    w2 = u(ks[2], (64, 128), b_l2)
    b2 = u(ks[3], (1, 128), b_l2)
    wih = u(ks[4], (128, 3 * state_dim), b_gru)
    bih = u(ks[5], (1, 3 * state_dim), b_gru)
    whh = u(ks[6], (state_dim, 3 * state_dim), b_gru)
    bhh = u(ks[7], (1, 3 * state_dim), b_gru)
    return (w1, b1, w2, b2, wih, bih, whh, bhh)


def reference(x, h, params):
    """Pure-JAX f32 reference matching torch: relu(l1), relu(l2), GRUCell."""
    w1, b1, w2, b2, wih, bih, whh, bhh = params
    s = h.shape[1]
    a = jnp.maximum(x @ w1 + b1, 0.0)
    a = jnp.maximum(a @ w2 + b2, 0.0)
    gi = a @ wih + bih
    gh = h @ whh + bhh
    r = jax.nn.sigmoid(gi[:, :s] + gh[:, :s])
    z = jax.nn.sigmoid(gi[:, s:2 * s] + gh[:, s:2 * s])
    n = jnp.tanh(gi[:, 2 * s:] + r * gh[:, 2 * s:])
    return (1.0 - z) * n + z * h


if __name__ == "__main__":
    state_dim, obs_dim, num_actions = 24, 16, 8

    key = jax.random.PRNGKey(0)
    kx, kh, kp = jax.random.split(key, 3)

    params = init_params(kp, state_dim, obs_dim, num_actions)
    prepared = prepare_params(params)

    # (batch, max_block_b): exercises the exact-fit single-tile path (8),
    # the minimally padded single-tile path (300 -> 304), and a multi-step
    # grid (300 with 128-row cap -> 3 tiles) where weights stay resident.
    for batch, max_blk in ((8, 1024), (300, 1024), (300, 128)):
        x = jax.random.normal(jax.random.fold_in(kx, batch),
                              (batch, obs_dim + num_actions), jnp.float32)
        h = jax.random.normal(jax.random.fold_in(kh, batch),
                              (batch, state_dim), jnp.float32)
        out = jax.block_until_ready(
            ais_generate(x, h, prepared, max_block_b=max_blk))
        ref = reference(x, h, params)
        assert out.shape == (batch, state_dim)
        # bf16 MXU operands on the feed-forward path -> looser tolerance than
        # a pure-f32 pipeline.
        err = float(jnp.max(jnp.abs(out - ref)))
        assert jnp.allclose(out, ref, atol=3e-2, rtol=3e-2), (
            f"mismatch vs reference at batch={batch}, max_blk={max_blk}: "
            f"max abs err {err}")
    print("KERNEL_OK")
</pallas_src>

<mosaic_0001>
module attributes {stable_mosaic.version = 11 : i64} {
  func.func @_ais_generate_kernel(%arg0: i32, %arg1: memref<8x24xf32, #tpu.memory_space<vmem>>, %arg2: memref<8x24xf32, #tpu.memory_space<vmem>>, %arg3: memref<24x64xbf16, #tpu.memory_space<vmem>>, %arg4: memref<1x64xf32, #tpu.memory_space<vmem>>, %arg5: memref<64x128xbf16, #tpu.memory_space<vmem>>, %arg6: memref<1x128xf32, #tpu.memory_space<vmem>>, %arg7: memref<128x72xbf16, #tpu.memory_space<vmem>>, %arg8: memref<1x72xf32, #tpu.memory_space<vmem>>, %arg9: memref<24x72xf32, #tpu.memory_space<vmem>>, %arg10: memref<1x72xf32, #tpu.memory_space<vmem>>, %arg11: memref<8x24xf32, #tpu.memory_space<vmem>>) attributes {dimension_semantics = [#tpu.dimension_semantics<parallel>], iteration_bounds = array<i64: 1>, scalar_prefetch = 0 : i64, scratch_operands = 0 : i64, tpu.core_type = #tpu.core_type<tc>, window_params = [{transform_indices = @transform_0, window_bounds = array<i64: 8, 24>}, {transform_indices = @transform_1, window_bounds = array<i64: 8, 24>}, {pipeline_mode = #tpu.pipeline_mode<synchronous>, transform_indices = @transform_2, window_bounds = array<i64: 24, 64>}, {pipeline_mode = #tpu.pipeline_mode<synchronous>, transform_indices = @transform_3, window_bounds = array<i64: 1, 64>}, {pipeline_mode = #tpu.pipeline_mode<synchronous>, transform_indices = @transform_4, window_bounds = array<i64: 64, 128>}, {pipeline_mode = #tpu.pipeline_mode<synchronous>, transform_indices = @transform_5, window_bounds = array<i64: 1, 128>}, {pipeline_mode = #tpu.pipeline_mode<synchronous>, transform_indices = @transform_6, window_bounds = array<i64: 128, 72>}, {pipeline_mode = #tpu.pipeline_mode<synchronous>, transform_indices = @transform_7, window_bounds = array<i64: 1, 72>}, {pipeline_mode = #tpu.pipeline_mode<synchronous>, transform_indices = @transform_8, window_bounds = array<i64: 24, 72>}, {pipeline_mode = #tpu.pipeline_mode<synchronous>, transform_indices = @transform_9, window_bounds = array<i64: 1, 72>}, {transform_indices = @transform_10, window_bounds = array<i64: 8, 24>}]} {
    %c0 = arith.constant 0 : index
    %c0_0 = arith.constant 0 : index
    %0 = vector.load %arg1[%c0, %c0_0] : memref<8x24xf32, #tpu.memory_space<vmem>>, vector<8x24xf32>
    %1 = arith.truncf %0 : vector<8x24xf32> to vector<8x24xbf16>
    %c0_1 = arith.constant 0 : index
    %c0_2 = arith.constant 0 : index
    %2 = vector.load %arg2[%c0_1, %c0_2] : memref<8x24xf32, #tpu.memory_space<vmem>>, vector<8x24xf32>
    %c0_3 = arith.constant 0 : index
    %c0_4 = arith.constant 0 : index
    %3 = vector.load %arg3[%c0_3, %c0_4] : memref<24x64xbf16, #tpu.memory_space<vmem>>, vector<24x64xbf16>
    %cst = arith.constant dense<0.000000e+00> : vector<8x64xf32>
    %4 = tpu.matmul %1, %3, %cst {dimension_numbers = #tpu.dot_dimension_numbers<[1], [0], [0], [1], [0, 0, 1, 1], [], []>} : vector<8x24xbf16>, vector<24x64xbf16>, vector<8x64xf32> -> vector<8x64xf32>
    %c0_5 = arith.constant 0 : index
    %c0_6 = arith.constant 0 : index
    %5 = vector.load %arg4[%c0_5, %c0_6] : memref<1x64xf32, #tpu.memory_space<vmem>>, vector<1x64xf32>
    %6 = vector.broadcast %5 : vector<1x64xf32> to vector<8x64xf32>
    %7 = arith.addf %4, %6 : vector<8x64xf32>
    %cst_7 = arith.constant 0.000000e+00 : f32
    %8 = vector.broadcast %cst_7 : f32 to vector<8x64xf32>
    %9 = arith.maximumf %7, %8 : vector<8x64xf32>
    %10 = arith.truncf %9 : vector<8x64xf32> to vector<8x64xbf16>
    %c0_8 = arith.constant 0 : index
    %c0_9 = arith.constant 0 : index
    %11 = vector.load %arg5[%c0_8, %c0_9] : memref<64x128xbf16, #tpu.memory_space<vmem>>, vector<64x128xbf16>
    %cst_10 = arith.constant dense<0.000000e+00> : vector<8x128xf32>
    %12 = tpu.matmul %10, %11, %cst_10 {dimension_numbers = #tpu.dot_dimension_numbers<[1], [0], [0], [1], [0, 0, 1, 1], [], []>} : vector<8x64xbf16>, vector<64x128xbf16>, vector<8x128xf32> -> vector<8x128xf32>
    %c0_11 = arith.constant 0 : index
    %c0_12 = arith.constant 0 : index
    %13 = vector.load %arg6[%c0_11, %c0_12] : memref<1x128xf32, #tpu.memory_space<vmem>>, vector<1x128xf32>
    %14 = vector.broadcast %13 : vector<1x128xf32> to vector<8x128xf32>
    %15 = arith.addf %12, %14 : vector<8x128xf32>
    %cst_13 = arith.constant 0.000000e+00 : f32
    %16 = vector.broadcast %cst_13 : f32 to vector<8x128xf32>
    %17 = arith.maximumf %15, %16 : vector<8x128xf32>
    %18 = arith.truncf %17 : vector<8x128xf32> to vector<8x128xbf16>
    %c0_14 = arith.constant 0 : index
    %c0_15 = arith.constant 0 : index
    %19 = vector.load %arg7[%c0_14, %c0_15] : memref<128x72xbf16, #tpu.memory_space<vmem>>, vector<128x72xbf16>
    %cst_16 = arith.constant dense<0.000000e+00> : vector<8x72xf32>
    %20 = tpu.matmul %18, %19, %cst_16 {dimension_numbers = #tpu.dot_dimension_numbers<[1], [0], [0], [1], [0, 0, 1, 1], [], []>} : vector<8x128xbf16>, vector<128x72xbf16>, vector<8x72xf32> -> vector<8x72xf32>
    %c0_17 = arith.constant 0 : index
    %c0_18 = arith.constant 0 : index
    %21 = vector.load %arg8[%c0_17, %c0_18] : memref<1x72xf32, #tpu.memory_space<vmem>>, vector<1x72xf32>
    %22 = vector.broadcast %21 : vector<1x72xf32> to vector<8x72xf32>
    %23 = arith.addf %20, %22 : vector<8x72xf32>
    %c0_19 = arith.constant 0 : index
    %c0_20 = arith.constant 0 : index
    %24 = vector.load %arg9[%c0_19, %c0_20] : memref<24x72xf32, #tpu.memory_space<vmem>>, vector<24x72xf32>
    %cst_21 = arith.constant dense<0.000000e+00> : vector<8x72xf32>
    %25 = tpu.matmul %2, %24, %cst_21 {dimension_numbers = #tpu.dot_dimension_numbers<[1], [0], [0], [1], [0, 0, 1, 1], [], []>} : vector<8x24xf32>, vector<24x72xf32>, vector<8x72xf32> -> vector<8x72xf32>
    %c0_22 = arith.constant 0 : index
    %c0_23 = arith.constant 0 : index
    %26 = vector.load %arg10[%c0_22, %c0_23] : memref<1x72xf32, #tpu.memory_space<vmem>>, vector<1x72xf32>
    %27 = vector.broadcast %26 : vector<1x72xf32> to vector<8x72xf32>
    %28 = arith.addf %25, %27 : vector<8x72xf32>
    %29 = vector.extract_strided_slice %23 {offsets = [0, 0], sizes = [8, 24], strides = [1, 1]} : vector<8x72xf32> to vector<8x24xf32>
    %30 = vector.extract_strided_slice %28 {offsets = [0, 0], sizes = [8, 24], strides = [1, 1]} : vector<8x72xf32> to vector<8x24xf32>
    %31 = arith.addf %29, %30 : vector<8x24xf32>
    %32 = arith.negf %31 : vector<8x24xf32>
    %33 = math.exp %32 : vector<8x24xf32>
    %cst_24 = arith.constant 1.000000e+00 : f32
    %34 = vector.broadcast %cst_24 : f32 to vector<8x24xf32>
    %35 = arith.addf %34, %33 : vector<8x24xf32>
    %36 = arith.divf %34, %35 : vector<8x24xf32>
    %37 = vector.extract_strided_slice %23 {offsets = [0, 24], sizes = [8, 24], strides = [1, 1]} : vector<8x72xf32> to vector<8x24xf32>
    %38 = vector.extract_strided_slice %28 {offsets = [0, 24], sizes = [8, 24], strides = [1, 1]} : vector<8x72xf32> to vector<8x24xf32>
    %39 = arith.addf %37, %38 : vector<8x24xf32>
    %40 = arith.negf %39 : vector<8x24xf32>
    %41 = math.exp %40 : vector<8x24xf32>
    %cst_25 = arith.constant 1.000000e+00 : f32
    %42 = vector.broadcast %cst_25 : f32 to vector<8x24xf32>
    %43 = arith.addf %42, %41 : vector<8x24xf32>
    %44 = arith.divf %42, %43 : vector<8x24xf32>
    %45 = vector.extract_strided_slice %23 {offsets = [0, 48], sizes = [8, 24], strides = [1, 1]} : vector<8x72xf32> to vector<8x24xf32>
    %46 = vector.extract_strided_slice %28 {offsets = [0, 48], sizes = [8, 24], strides = [1, 1]} : vector<8x72xf32> to vector<8x24xf32>
    %47 = arith.mulf %36, %46 : vector<8x24xf32>
    %48 = arith.addf %45, %47 : vector<8x24xf32>
    %49 = math.tanh %48 : vector<8x24xf32>
    %cst_26 = arith.constant 1.000000e+00 : f32
    %50 = vector.broadcast %cst_26 : f32 to vector<8x24xf32>
    %51 = arith.subf %50, %44 : vector<8x24xf32>
    %52 = arith.mulf %51, %49 : vector<8x24xf32>
    %53 = arith.mulf %44, %2 : vector<8x24xf32>
    %54 = arith.addf %52, %53 : vector<8x24xf32>
    %c0_27 = arith.constant 0 : index
    %c0_28 = arith.constant 0 : index
    %55 = vector.load %arg11[%c0_27, %c0_28] : memref<8x24xf32, #tpu.memory_space<vmem>>, vector<8x24xf32>
    tpu.vector_store %arg11[%c0_27, %c0_28], %54 {strides = array<i32>} : memref<8x24xf32, #tpu.memory_space<vmem>>, vector<8x24xf32>,
    return
  }
  func.func @transform_0(%arg0: i32) -> (i32, i32) {
    %c0_i32 = arith.constant 0 : i32
    %c0_i32_0 = arith.constant 0 : i32
    return %arg0, %c0_i32 : i32, i32
  }
  func.func @transform_1(%arg0: i32) -> (i32, i32) {
    %c0_i32 = arith.constant 0 : i32
    %c0_i32_0 = arith.constant 0 : i32
    return %arg0, %c0_i32 : i32, i32
  }
  func.func @transform_2(%arg0: i32) -> (i32, i32) {
    %c0_i32 = arith.constant 0 : i32
    %c0_i32_0 = arith.constant 0 : i32
    %c0_i32_1 = arith.constant 0 : i32
    return %c0_i32, %c0_i32_0 : i32, i32
  }
  func.func @transform_3(%arg0: i32) -> (i32, i32) {
    %c0_i32 = arith.constant 0 : i32
    %c0_i32_0 = arith.constant 0 : i32
    %c0_i32_1 = arith.constant 0 : i32
    return %c0_i32, %c0_i32_0 : i32, i32
  }
  func.func @transform_4(%arg0: i32) -> (i32, i32) {
    %c0_i32 = arith.constant 0 : i32
    %c0_i32_0 = arith.constant 0 : i32
    %c0_i32_1 = arith.constant 0 : i32
    return %c0_i32, %c0_i32_0 : i32, i32
  }
  func.func @transform_5(%arg0: i32) -> (i32, i32) {
    %c0_i32 = arith.constant 0 : i32
    %c0_i32_0 = arith.constant 0 : i32
    %c0_i32_1 = arith.constant 0 : i32
    return %c0_i32, %c0_i32_0 : i32, i32
  }
  func.func @transform_6(%arg0: i32) -> (i32, i32) {
    %c0_i32 = arith.constant 0 : i32
    %c0_i32_0 = arith.constant 0 : i32
    %c0_i32_1 = arith.constant 0 : i32
    return %c0_i32, %c0_i32_0 : i32, i32
  }
  func.func @transform_7(%arg0: i32) -> (i32, i32) {
    %c0_i32 = arith.constant 0 : i32
    %c0_i32_0 = arith.constant 0 : i32
    %c0_i32_1 = arith.constant 0 : i32
    return %c0_i32, %c0_i32_0 : i32, i32
  }
  func.func @transform_8(%arg0: i32) -> (i32, i32) {
    %c0_i32 = arith.constant 0 : i32
    %c0_i32_0 = arith.constant 0 : i32
    %c0_i32_1 = arith.constant 0 : i32
    return %c0_i32, %c0_i32_0 : i32, i32
  }
  func.func @transform_9(%arg0: i32) -> (i32, i32) {
    %c0_i32 = arith.constant 0 : i32
    %c0_i32_0 = arith.constant 0 : i32
    %c0_i32_1 = arith.constant 0 : i32
    return %c0_i32, %c0_i32_0 : i32, i32
  }
  func.func @transform_10(%arg0: i32) -> (i32, i32) {
    %c0_i32 = arith.constant 0 : i32
    %c0_i32_0 = arith.constant 0 : i32
    return %arg0, %c0_i32 : i32, i32
  }
}

</mosaic_0001>

<bundles_post_ra>
// kernel: tpu_custom_call.1
= control target key start
LH: loop header
LB: loop body
LE: loop exit
PB: predicated region body
PF: predicated region fallthrough
CT: control target
= control target key end

     0   :  { %v583_v1 = vmov 0.0   ;;  %vm63_vm0 = vcmask 1043456   ;;  %vm584_vm1 = vmmov 0   ;;  %vm59_vm2 = vcmask 195584   ;;  %s753_s0 = inlined_call_operand.vmem [shape: f32[8,24], index: 0, kind: input, shape index: {}]   ;;  %s754_s1 = inlined_call_operand.vmem [shape: f32[8,24], index: 1, kind: input, shape index: {}]   ;;  %s755_s2 = inlined_call_operand.vmem [shape: bf16[24,64], index: 2, kind: input, shape index: {}]   ;;  %s756_s3 = inlined_call_operand.vmem [shape: f32[1,64], index: 3, kind: input, shape index: {}]   ;;  %s757_s4 = inlined_call_operand.vmem [shape: bf16[64,128], index: 4, kind: input, shape index: {}]   ;;  %s758_s5 = inlined_call_operand.vmem [shape: f32[1,128], index: 5, kind: input, shape index: {}]   ;;  %s759_s6 = inlined_call_operand.vmem [shape: bf16[128,72], index: 6, kind: input, shape index: {}]   ;;  %s760_s7 = inlined_call_operand.vmem [shape: f32[1,72], index: 7, kind: input, shape index: {}]   ;;  %s761_s8 = inlined_call_operand.vmem [shape: f32[24,72], index: 8, kind: input, shape index: {}]   ;;  %s762_s9 = inlined_call_operand.vmem [shape: f32[1,72], index: 9, kind: input, shape index: {}]   ;;  %s763_s10 = inlined_call_operand.hbm [shape: f32[8,24], index: 10, kind: output, shape index: {}]  }
   0x1   :  { %v539_v0 = vld [vmem:[%s755_s2] sm:$0xff]   ;;  %479 = vmatprep.subr.bf16.mxu1 %v583_v1  ;;  %v540_v2 = vld [vmem:[%s755_s2 + $0x8] ss:$0 sps:$4 sm:$0xff]   ;;  %499 = vmatprep.subr.bf16.mxu0 %v583_v1 }
   0x2   :  { %480 = vmatpush3.bf16.msra.mxu1 %v539_v0  ;;  %483 = vmatprep.mubr.msk.bf16.mxu1 %vm584_vm1, %v583_v1  ;;  %v37_v3 = vld [vmem:[%s753_s0] sm:$0xff]  ;;  %v65_v4 = vsel %vm63_vm0, %v540_v2, 0  ;;  %v542_v7 = vld [vmem:[%s757_s4 + $0x8] sm:$0xff]  }
   0x3   :  { %481 = vmatprep.subr.bf16.mxu1 %v583_v1  ;;  %515 = vmatprep.mubr.msk.bf16.mxu0 %vm584_vm1, %v583_v1  ;;  %v541_v5 = vld [vmem:[%s757_s4] sm:$0xff]   ;;  %v38_v6 = vpack.c.bf16 %v37_v3, %v37_v3 }
   0x6   :  { %482 = vmatpush3.bf16.msra.mxu1 %v65_v4 }
   0x7   :  { %487 = vmatprep.subr.bf16.mxu1 %v583_v1 }
   0x9   :  { %484 = vmatmul.mubr.msk.bf16.vlgmr.msra.gmra.mrb[0].mxu1 %vm59_vm2, %v38_v6 }
   0xa   :  { %488 = vmatpush3.bf16.msra.mxu1 %v541_v5  ;;  %495 = vmatprep.mubr.msk.bf16.mxu1 %vm584_vm1, %v583_v1 }
   0xb   :  { %489 = vmatprep.subr.bf16.mxu1 %v583_v1 }
   0xc   :  { %15 = vsyncpa [#allocation3], 0  ;;  %v543_v8 = vld [vmem:[%s757_s4 + $0x10] sm:$0xff]   ;;  %v544_v9 = vld [vmem:[%s757_s4 + $0x18] sm:$0xff]   ;;  %v585_v10 = vmov 0.0|0.0   ;;  %vm148_vm3 = vcmask 523264  }
   0xd   :  { %v545_v11 = vld [vmem:[%s759_s6] sm:$0xff]   ;;  %v546_v12 = vld [vmem:[%s759_s6 + $0x8] sm:$0xff]   ;;  %v547_v13 = vld [vmem:[%s759_s6 + $0x10] sm:$0xff]   ;;  %s590_s4 = smov [#allocation2]  }
   0xe   :  { %490 = vmatpush3.bf16.msra.mxu1 %v542_v7  ;;  %500 = vmatpush3.bf16.msra.mxu0 %v545_v11  ;;  %v548_v14 = vld [vmem:[%s759_s6 + $0x18] sm:$0xff]   ;;  %v549_v15 = vld [vmem:[%s759_s6 + $0x20] sm:$0xff]   ;;  %v550_v16 = vld [vmem:[%s759_s6 + $0x28] sm:$0xff]   ;;  %s428_s11 = sshll.u32 %s590_s4, 4  ;;  %s429_s11 = int_to_ptr.vmem [resolvable:$true] %s428_s11 }
   0xf   :  { %491 = vmatprep.subr.bf16.mxu1 %v583_v1  ;;  %501 = vmatprep.subr.bf16.mxu0 %v583_v1  ;;  %v436_v17 = vld [vmem:[%s756_s3] ss:$0 sm:$0xff]  ;;  %v306_v22 = vld [vmem:[%s761_s8 + $0x8] sm:$0xff]  ;;  %v307_v28 = vld [vmem:[%s761_s8 + $0x10] sm:$0xff]  ;;  %s559_s12 = scalar_lea.vmem %s429_s11, 128  ;;  %p564_p1 = scmp.lt.s32.totalorder %s429_s11, %s429_s11 }
  0x10   :  { %v305_v21 = vld [vmem:[%s761_s8] sm:$0xff]  ;;  %v551_v30 = vld [vmem:[%s759_s6 + $0x30] sm:$0xff]   ;;  %v552_v31 = vld [vmem:[%s759_s6 + $0x38] sm:$0xff]   ;;  %s586_s6 = smov 80   ;;  %p560_p0 = scmp.ne.s32.totalorder %s429_s11, %s559_s12 }
  0x11   :  { %v529_v26 = vpack.c.bf16 %v306_v22, %v305_v21  ;;  %v39_v29 = vld [vmem:[%s754_s1] sm:$0xff]  ;;  %p565_p2 = scmp.lt.s32.totalorder %s559_s12, %s559_s12 }
  0x12   :  { %492 = vmatpush3.bf16.msra.mxu1 %v543_v8  ;;  %502 = vmatpush3.bf16.msra.mxu0 %v546_v12  ;;  %v440_v32 = vld [vmem:[%s758_s5] ss:$0 sm:$0xff]  ;;  %s587_s5 = smov 48  }
  0x13   :  { %493 = vmatprep.subr.bf16.mxu1 %v583_v1  ;;  %503 = vmatprep.subr.bf16.mxu0 %v583_v1  ;;  %v455_v40 = vld [vmem:[%s762_s9] ss:$0 sm:$0xff]  ;;  %s589_s9 = smov 24   ;;  %p566_p3 = por %p565_p2, %p564_p1 }
  0x14   :  { %v446_v44 = vld [vmem:[%s760_s7] ss:$0 sm:$0xff]  ;;  %s588_s7 = smov 104  }
  0x15   :  { %p567_p4 = pnand %p566_p3, %p560_p0 }
  0x16   :  { %494 = vmatpush3.bf16.msra.mxu1 %v544_v9  ;;  %504 = vmatpush3.bf16.msra.mxu0 %v547_v13 }
  0x17   :  { %528 = vmatprep.subr.bf16.mxu1 %v585_v10  ;;  %505 = vmatprep.subr.bf16.mxu0 %v583_v1 }
  0x1a   :  { %506 = vmatpush3.bf16.msra.mxu0 %v548_v14 }
  0x1b   :  { %507 = vmatprep.subr.bf16.mxu0 %v583_v1 }
  0x1e   :  { %508 = vmatpush3.bf16.msra.mxu0 %v549_v15 }
  0x1f   :  { %509 = vmatprep.subr.bf16.mxu0 %v583_v1 }
  0x22   :  { %510 = vmatpush3.bf16.msra.mxu0 %v550_v16 }
  0x23   :  { %511 = vmatprep.subr.bf16.mxu0 %v583_v1 }
  0x26   :  { %512 = vmatpush3.bf16.msra.mxu0 %v551_v30 }
  0x27   :  { %513 = vmatprep.subr.bf16.mxu0 %v583_v1 }
  0x2a   :  { %514 = vmatpush3.bf16.msra.mxu0 %v552_v31 }
  0xdc   :  { %v101_v18 = vpop.f32.mrb[0].mxu1 }
  0xdd   :  { %v102_v19 = vadd.f32 %v436_v17, %v101_v18  ;;  %v485_v20 = vpop.f32.mrb[1].mxu1 }
  0xde   :  { %v104_v23 = vpop.f32.mrb[2].mxu1 }
  0xdf   :  { %v107_v24 = vmax.f32 %v102_v19, 0.0  ;;  %v486_v25 = vpop.f32.mrb[3].mxu1 }
  0xe1   :  { %v108_v27 = vpack.c.bf16 %v107_v24, %v107_v24 }
  0xe3   :  { %496 = vmatmul.mubr.msk.bf16.vlgmr.msra.gmra.mrb[4].mxu1 %vm148_vm3, %v108_v27 }
  0xe4   :  { %530 = vmatpush3.bf16.msra.mxu1 %v529_v26  ;;  %525 = vmatprep.mubr.msk.f32.mxu1 %vm584_vm1, %v583_v1 }
  0xe5   :  { %523 = vmatprep.subr.mxu1 %v583_v1 }
  0xe8   :  { %524 = vmatpush3.msra.mxu1 %v307_v28 }
  0xeb   :  { %526 = vmatmul.mubr.msk.f32.vlgmr.msra.gmra.mrb[8].mxu1 %vm59_vm2, %v39_v29 }
 0x1b6   :  { %v186_v33 = vpop.f32.mrb[4].mxu1 }
 0x1b7   :  { %v187_v34 = vadd.f32 %v440_v32, %v186_v33  ;;  %v497_v35 = vpop.f32.mrb[5].mxu1 }
 0x1b8   :  { %v189_v36 = vpop.f32.mrb[6].mxu1 }
 0x1b9   :  { %v192_v37 = vmax.f32 %v187_v34, 0.0  ;;  %v498_v38 = vpop.f32.mrb[7].mxu1 }
 0x1bb   :  { %v193_v39 = vpack.c.bf16 %v192_v37, %v192_v37 }
 0x1bd   :  { %516 = vmatmul.mubr.bf16.vlgmr.msra.gmra.mrb[0].mxu0 %v193_v39 }
 0x1be   :  { %v384_v41 = vpop.f32.mrb[8].mxu1 }
 0x1bf   :  { %v385_v42 = vadd.f32 %v455_v40, %v384_v41  ;;  %v527_v43 = vpop.f32.mrb[9].mxu1 }
 0x1c1   :  { %396 = vrot.lane.b32.xlu0 %v385_v42, %s586_s6 }
 0x233   :  { %v397_v54 = vpop.permute.xlu0 %396 }
 0x290   :  { %v299_v45 = vpop.f32.mrb[0].mxu0 }
 0x291   :  { %v300_v46 = vadd.f32 %v446_v44, %v299_v45  ;;  %v517_v47 = vpop.f32.mrb[1].mxu0 }
 0x292   :  { %v302_v48 = vpop.f32.mrb[2].mxu0 }
 0x293   :  { %v388_v49 = vadd.f32 %v385_v42, %v300_v46  ;;  %v518_v50 = vpop.f32.mrb[3].mxu0 }
 0x295   :  { %v457_v51 = vmul.f32 -1.442695, %v388_v49 }
 0x297   :  { %553 = vpow2.f32 %v457_v51 }
 0x2a1   :  { %v554_v52 = vpop.eup %553 }
 0x2a2   :  { %v392_v53 = vadd.f32 1.0, %v554_v52 }
 0x2a4   :  { %555 = vrcp.f32 %v392_v53 }
 0x2ae   :  { %v556_v55 = vpop.eup %555 }
 0x2af   :  { %v399_v56 = vmul.f32 %v556_v55, %v397_v54  ;;  %v406_v61 = vsub.f32 1.0, %v556_v55 }
 0x2b1   :  { %401 = vrot.lane.b32.xlu0 %v399_v56, %s587_s5 }
 0x323   :  { %v402_v57 = vpop.permute.xlu0 %401 }
 0x324   :  { %v404_v58 = vadd.f32 %v402_v57, %v300_v46 }
 0x326   :  { %557 = vtanh.f32 %v404_v58 }
 0x330   :  { %v558_v59 = vpop.eup %557 }
 0x331   :  { %408 = vrot.lane.b32.xlu1 %v558_v59, %s588_s7 }
 0x335   :  { %412 = vrot.lane.b32.xlu1 %v39_v29, %s589_s9 }
 0x3a3   :  { %v409_v60 = vpop.permute.xlu1 %408 }
 0x3a4   :  { %v411_v63 = vmul.f32 %v409_v60, %v406_v61 }
 0x3a7   :  { %v413_v62 = vpop.permute.xlu1 %412 }
 0x3a8   :  { %v415_v0 = vmul.f32 %v556_v55, %v413_v62 }
 0x3aa   :  { %v416_v1 = vadd.f32 %v415_v0, %v411_v63 }
 0x3ac   :  { %418 = vrot.lane.b32.xlu0 %v416_v1, %s588_s7 }
 0x41e   :  { %v419_v2 = vpop.permute.xlu0 %418 }
 0x41f   :  { %421 = vst.msk [vmem:[#allocation2] sm:$0xff] %vm59_vm2, %v419_v2 }
 0x420   :  { %570 = shalt.err (!%p567_p4)
}
 0x421   :  { %s571_s15 = scalar_lea.hbm %s763_s10, 128 }
 0x422   :  { %p572_p5 = scmp.ne.s32.totalorder %s763_s10, %s571_s15  ;;  %p575_p6 = scmp.lt.u32.totalorder %s571_s15, %s763_s10 }
 0x424   :  { %p577_p7 = pnand %p575_p6, %p572_p5 }
 0x426   :  { %580 = shalt.err (!%p577_p7)
}
 0x427   :  { %431 = dma.vmem_to_hbm [thread:$0]  %s429_s11, 128, %s763_s10, [#allocation3]  }
 0x428   :  { %581 = dma.done.wait [#allocation3], 128  }
 0x429   :  { %582 = vsyncadd [#allocation3], 4294967168 }
 0x42a   :  { %435 = vsyncpa [#allocation3], 1 }

</bundles_post_ra>
